<compile_context>
chip_gen: v7x
topology: tpu7x:2x2x1
jax: 0.10.0
libtpu: 0.0.40
codegen_flags: <defaults>
</compile_context>

<pallas_src>
import functools

import jax
import jax.numpy as jnp
from jax.experimental import pallas as pl
from jax.experimental.pallas import tpu as pltpu


def _round_up(n, m):
    return ((n + m - 1) // m) * m


@functools.lru_cache(maxsize=1)
def _vmem_capacity_bytes():
    """Physical VMEM per TensorCore; conservative 64 MiB fallback."""
    try:
        cap = getattr(pltpu.get_tpu_info(), "vmem_capacity_bytes", None)
        if cap:
            return int(cap)
    except Exception:
        pass
    return 64 * 1024 * 1024


def _layernorm_store(y, o_ref):
    # gamma=1, beta=0, eps=1e-5, biased variance (fresh nn.LayerNorm).
    mean = jnp.mean(y, axis=-1, keepdims=True)
    centered = y - mean
    var = jnp.mean(centered * centered, axis=-1, keepdims=True)
    o_ref[...] = (centered * jax.lax.rsqrt(var + 1e-5)).astype(o_ref.dtype)


def _ffn_ln_kernel_single(x_ref, w1_ref, b1_ref, w2_ref, b2_ref, o_ref, *,
                          cast_bf16):
    """Single d_ff tile: no accumulator scratch; weights stay VMEM-resident."""
    x = x_ref[...]
    w1 = w1_ref[...]
    w2 = w2_ref[...]
    if cast_bf16:
        xm = x.astype(jnp.bfloat16)
        w1 = w1.astype(jnp.bfloat16)
        w2 = w2.astype(jnp.bfloat16)
    else:
        xm = x
    h = jnp.dot(xm, w1, preferred_element_type=jnp.float32)
    h = jnp.maximum(h + b1_ref[...].astype(jnp.float32), 0.0)
    h = h.astype(jnp.bfloat16 if cast_bf16 else w2.dtype)
    y = jnp.dot(h, w2, preferred_element_type=jnp.float32)
    y = y + b2_ref[...].astype(jnp.float32) + x.astype(jnp.float32)
    _layernorm_store(y, o_ref)


def _ffn_ln_kernel_multi(x_ref, w1_ref, b1_ref, w2_ref, b2_ref, o_ref,
                         acc_ref, *, cast_bf16):
    """Streamed d_ff: grid=(token tiles, d_ff tiles), f32 acc in scratch."""
    k = pl.program_id(1)

    @pl.when(k == 0)
    def _():
        acc_ref[...] = jnp.zeros_like(acc_ref)

    x = x_ref[...]
    w1 = w1_ref[...]
    w2 = w2_ref[...]
    if cast_bf16:
        xm = x.astype(jnp.bfloat16)
        w1 = w1.astype(jnp.bfloat16)
        w2 = w2.astype(jnp.bfloat16)
    else:
        xm = x
    h = jnp.dot(xm, w1, preferred_element_type=jnp.float32)
    h = jnp.maximum(h + b1_ref[...].astype(jnp.float32), 0.0)
    h = h.astype(jnp.bfloat16 if cast_bf16 else w2.dtype)
    acc_ref[...] += jnp.dot(h, w2, preferred_element_type=jnp.float32)

    @pl.when(k == pl.num_programs(1) - 1)
    def _():
        y = acc_ref[...] + b2_ref[...].astype(jnp.float32) + x.astype(jnp.float32)
        _layernorm_store(y, o_ref)


def _vmem_estimate(tm, tk, E, d_ff, xi, wi):
    """Corrected VMEM estimate incl. the (TM, TK) f32 intermediate."""
    kk = min(tk, d_ff)
    need = 2 * tm * E * xi                        # x tile (double buffered)
    need += 2 * tm * E * xi                       # out tile
    need += 2 * E * kk * wi                       # W1 slab
    need += 2 * kk * E * wi                       # W2 slab
    need += 2 * 8 * kk * wi + 2 * 8 * E * wi      # biases (sublane padded)
    need += tm * kk * 4 + tm * kk * max(wi, 2)    # h (f32) + cast copy
    need += 2 * tm * E * 4                        # f32 acc / epilogue temps
    return int(need * 1.15)


def _select_tiles(n_tok, E, d_ff, x_itemsize, w_itemsize, block_rows, block_k):
    cap = _vmem_capacity_bytes()
    big_vmem = cap > 100 * 1024 * 1024            # v5e/v6e: 128 MiB; v7x: 64 MiB
    if block_rows is None:
        block_rows = 512                          # above v6e/v7x compute/HBM ridge
    if block_k is None:
        block_k = 2048 if big_vmem else 1024

    min_sub = {4: 8, 2: 16, 1: 32}.get(x_itemsize, 8)
    tm = min(_round_up(block_rows, min_sub), _round_up(n_tok, min_sub))

    # v7x-like parts (2 TensorCores): give the parallel token axis >= 2 tiles.
    if not big_vmem and n_tok > min_sub and _round_up(n_tok, tm) // tm < 2:
        tm = _round_up((n_tok + 1) // 2, min_sub)

    tk = min(block_k, d_ff)
    if tk < d_ff:                                 # streamed d_ff: lane-aligned
        tk = max(128, (tk // 128) * 128)

    budget = int(cap * 0.80)
    while _vmem_estimate(tm, tk, E, d_ff, x_itemsize, w_itemsize) > budget:
        if tk > 128:
            tk = max(128, (tk // 2 // 128) * 128)
        elif tm > min_sub:
            tm = max(min_sub, (tm // 2 // min_sub) * min_sub)
        else:
            break

    need = _vmem_estimate(tm, tk, E, d_ff, x_itemsize, w_itemsize)
    vmem_limit = min(max(int(need * 1.5), 32 * 1024 * 1024), int(cap * 0.90))
    return tm, tk, vmem_limit


@functools.partial(jax.jit,
                   static_argnames=("tm", "tk", "vmem_limit", "cast_bf16"))
def _poswise_ffn_impl(x, w1t, b1, w2t, b2, *, tm, tk, vmem_limit, cast_bf16):
    B, S, E = x.shape
    d_ff = w1t.shape[1]
    n_tok = B * S
    xi = x.dtype.itemsize
    wi = w1t.dtype.itemsize

    n_tok_p = _round_up(n_tok, tm)
    single_k = tk >= d_ff
    d_ff_p = d_ff if single_k else _round_up(d_ff, tk)

    x2d = x.reshape(n_tok, E)
    if n_tok_p != n_tok:
        x2d = jnp.pad(x2d, ((0, n_tok_p - n_tok), (0, 0)))
    if d_ff_p != d_ff:
        # Zero-padded d_ff columns are inert: relu(0 + 0) = 0 and the matching
        # W2 rows are zero, so they add nothing to the second matmul.
        w1t = jnp.pad(w1t, ((0, 0), (0, d_ff_p - d_ff)))
        b1 = jnp.pad(b1, (0, d_ff_p - d_ff))
        w2t = jnp.pad(w2t, ((0, d_ff_p - d_ff), (0, 0)))
    b1_2d = b1.reshape(1, d_ff_p)
    b2_2d = b2.reshape(1, E)

    n_row_tiles = n_tok_p // tm

    if single_k:
        grid = (n_row_tiles,)
        in_specs = [
            pl.BlockSpec((tm, E), lambda i: (i, 0)),        # x tile
            pl.BlockSpec((E, d_ff_p), lambda i: (0, 0)),    # W1^T (resident)
            pl.BlockSpec((1, d_ff_p), lambda i: (0, 0)),    # b1 (resident)
            pl.BlockSpec((d_ff_p, E), lambda i: (0, 0)),    # W2^T (resident)
            pl.BlockSpec((1, E), lambda i: (0, 0)),         # b2 (resident)
        ]
        out_specs = pl.BlockSpec((tm, E), lambda i: (i, 0))
        scratch_shapes = ()
        kernel = functools.partial(_ffn_ln_kernel_single, cast_bf16=cast_bf16)
        dim_sem = ("parallel",)
        weight_bytes = (2 * E * d_ff_p + 8 * d_ff_p + 8 * E) * wi
    else:
        grid = (n_row_tiles, d_ff_p // tk)
        in_specs = [
            pl.BlockSpec((tm, E), lambda i, k: (i, 0)),     # x (held over k)
            pl.BlockSpec((E, tk), lambda i, k: (0, k)),     # W1^T slab (streamed)
            pl.BlockSpec((1, tk), lambda i, k: (0, k)),     # b1 slab
            pl.BlockSpec((tk, E), lambda i, k: (k, 0)),     # W2^T slab (streamed)
            pl.BlockSpec((1, E), lambda i, k: (0, 0)),      # b2 (tiny, constant)
        ]
        out_specs = pl.BlockSpec((tm, E), lambda i, k: (i, 0))
        scratch_shapes = (pltpu.VMEM((tm, E), jnp.float32),)
        kernel = functools.partial(_ffn_ln_kernel_multi, cast_bf16=cast_bf16)
        dim_sem = ("parallel", "arbitrary")
        weight_bytes = n_row_tiles * (2 * E * d_ff_p + 8 * d_ff_p + 8 * E) * wi

    cost = pl.CostEstimate(
        flops=4 * n_tok_p * E * d_ff_p + 8 * n_tok_p * E,
        transcendentals=n_tok_p,
        bytes_accessed=2 * n_tok_p * E * xi + weight_bytes,
    )

    out2d = pl.pallas_call(
        kernel,
        out_shape=jax.ShapeDtypeStruct((n_tok_p, E), x.dtype),
        grid_spec=pltpu.PrefetchScalarGridSpec(
            num_scalar_prefetch=0,
            grid=grid,
            in_specs=in_specs,
            out_specs=out_specs,
            scratch_shapes=scratch_shapes,
        ),
        compiler_params=pltpu.CompilerParams(
            dimension_semantics=dim_sem,
            vmem_limit_bytes=vmem_limit,
        ),
        cost_estimate=cost,
    )(x2d, w1t, b1_2d, w2t, b2_2d)

    return out2d[:n_tok].reshape(B, S, E)


def poswise_ffn(x, w1t, b1, w2t, b2, *, block_rows=None, block_k=None,
                cast_bf16=False):
    """FFN + residual + LayerNorm.

    x: (B, S, E); w1t: (E, d_ff); b1: (d_ff,); w2t: (d_ff, E); b2: (E,).
    (PyTorch nn.Linear weights are (out, in); pass their transposes.)
    """
    B, S, E = x.shape
    d_ff = w1t.shape[1]
    tm, tk, vmem_limit = _select_tiles(B * S, E, d_ff, x.dtype.itemsize,
                                       w1t.dtype.itemsize, block_rows, block_k)
    return _poswise_ffn_impl(x, w1t, b1, w2t, b2, tm=tm, tk=tk,
                             vmem_limit=vmem_limit, cast_bf16=cast_bf16)


if __name__ == "__main__":
    # Small shapes consistent with the module: (batch, seq, embed_dim)
    B, S, E, D_FF = 2, 8, 32, 64

    key = jax.random.PRNGKey(0)
    k_x, k_w1, k_b1, k_w2, k_b2 = jax.random.split(key, 5)

    x = jax.random.normal(k_x, (B, S, E), dtype=jnp.float32)
    w1 = jax.random.normal(k_w1, (D_FF, E), dtype=jnp.float32) * 0.05
    b1 = jax.random.normal(k_b1, (D_FF,), dtype=jnp.float32) * 0.05
    w2 = jax.random.normal(k_w2, (E, D_FF), dtype=jnp.float32) * 0.05
    b2 = jax.random.normal(k_b2, (E,), dtype=jnp.float32) * 0.05

    def ref_fn(xx, w1_, b1_, w2_, b2_):
        h = jnp.maximum(xx @ w1_.T + b1_, 0.0)
        y = h @ w2_.T + b2_ + xx
        mean = jnp.mean(y, axis=-1, keepdims=True)
        var = jnp.mean((y - mean) ** 2, axis=-1, keepdims=True)
        return (y - mean) * jax.lax.rsqrt(var + 1e-5)

    # 1) single-k fast path (d_ff fits one tile; weights VMEM-resident).
    out = poswise_ffn(x, w1.T, b1, w2.T, b2)
    jax.block_until_ready(out)
    assert jnp.allclose(out, ref_fn(x, w1, b1, w2, b2), atol=1e-4, rtol=1e-4), \
        "mismatch vs reference (single-k path)"

    # 2) padded token count (token count not a tile multiple).
    x2 = jax.random.normal(jax.random.PRNGKey(1), (3, 5, E), dtype=jnp.float32)
    out2 = poswise_ffn(x2, w1.T, b1, w2.T, b2)
    jax.block_until_ready(out2)
    assert jnp.allclose(out2, ref_fn(x2, w1, b1, w2, b2), atol=1e-4, rtol=1e-4), \
        "mismatch vs reference (padded tokens)"

    # 3) streamed d_ff path (multi k-tile f32 accumulator).
    D_FF2 = 256
    kk = jax.random.split(jax.random.PRNGKey(2), 4)
    w1b = jax.random.normal(kk[0], (D_FF2, E), dtype=jnp.float32) * 0.05
    b1b = jax.random.normal(kk[1], (D_FF2,), dtype=jnp.float32) * 0.05
    w2b = jax.random.normal(kk[2], (E, D_FF2), dtype=jnp.float32) * 0.05
    b2b = jax.random.normal(kk[3], (E,), dtype=jnp.float32) * 0.05
    out3 = poswise_ffn(x, w1b.T, b1b, w2b.T, b2b, block_k=128)
    jax.block_until_ready(out3)
    assert jnp.allclose(out3, ref_fn(x, w1b, b1b, w2b, b2b), atol=1e-4, rtol=1e-4), \
        "mismatch vs reference (streamed d_ff path)"

    print("KERNEL_OK")
</pallas_src>

<mosaic_0001>
module attributes {stable_mosaic.version = 11 : i64} {
  func.func @_ffn_ln_kernel_single(%arg0: i32, %arg1: memref<8x32xf32, #tpu.memory_space<vmem>>, %arg2: memref<32x64xf32, #tpu.memory_space<vmem>>, %arg3: memref<1x64xf32, #tpu.memory_space<vmem>>, %arg4: memref<64x32xf32, #tpu.memory_space<vmem>>, %arg5: memref<1x32xf32, #tpu.memory_space<vmem>>, %arg6: memref<8x32xf32, #tpu.memory_space<vmem>>) attributes {dimension_semantics = [#tpu.dimension_semantics<parallel>], iteration_bounds = array<i64: 2>, scalar_prefetch = 0 : i64, scratch_operands = 0 : i64, tpu.core_type = #tpu.core_type<tc>, window_params = [{transform_indices = @transform_0, window_bounds = array<i64: 8, 32>}, {pipeline_mode = #tpu.pipeline_mode<synchronous>, transform_indices = @transform_1, window_bounds = array<i64: 32, 64>}, {pipeline_mode = #tpu.pipeline_mode<synchronous>, transform_indices = @transform_2, window_bounds = array<i64: 1, 64>}, {pipeline_mode = #tpu.pipeline_mode<synchronous>, transform_indices = @transform_3, window_bounds = array<i64: 64, 32>}, {pipeline_mode = #tpu.pipeline_mode<synchronous>, transform_indices = @transform_4, window_bounds = array<i64: 1, 32>}, {transform_indices = @transform_5, window_bounds = array<i64: 8, 32>}]} {
    %c0 = arith.constant 0 : index
    %c0_0 = arith.constant 0 : index
    %0 = vector.load %arg1[%c0, %c0_0] : memref<8x32xf32, #tpu.memory_space<vmem>>, vector<8x32xf32>
    %c0_1 = arith.constant 0 : index
    %c0_2 = arith.constant 0 : index
    %1 = vector.load %arg2[%c0_1, %c0_2] : memref<32x64xf32, #tpu.memory_space<vmem>>, vector<32x64xf32>
    %c0_3 = arith.constant 0 : index
    %c0_4 = arith.constant 0 : index
    %2 = vector.load %arg4[%c0_3, %c0_4] : memref<64x32xf32, #tpu.memory_space<vmem>>, vector<64x32xf32>
    %cst = arith.constant dense<0.000000e+00> : vector<8x64xf32>
    %3 = tpu.matmul %0, %1, %cst {dimension_numbers = #tpu.dot_dimension_numbers<[1], [0], [0], [1], [0, 0, 1, 1], [], []>} : vector<8x32xf32>, vector<32x64xf32>, vector<8x64xf32> -> vector<8x64xf32>
    %c0_5 = arith.constant 0 : index
    %c0_6 = arith.constant 0 : index
    %4 = vector.load %arg3[%c0_5, %c0_6] : memref<1x64xf32, #tpu.memory_space<vmem>>, vector<1x64xf32>
    %5 = vector.broadcast %4 : vector<1x64xf32> to vector<8x64xf32>
    %6 = arith.addf %3, %5 : vector<8x64xf32>
    %cst_7 = arith.constant 0.000000e+00 : f32
    %7 = vector.broadcast %cst_7 : f32 to vector<8x64xf32>
    %8 = arith.maximumf %6, %7 : vector<8x64xf32>
    %cst_8 = arith.constant dense<0.000000e+00> : vector<8x32xf32>
    %9 = tpu.matmul %8, %2, %cst_8 {dimension_numbers = #tpu.dot_dimension_numbers<[1], [0], [0], [1], [0, 0, 1, 1], [], []>} : vector<8x64xf32>, vector<64x32xf32>, vector<8x32xf32> -> vector<8x32xf32>
    %c0_9 = arith.constant 0 : index
    %c0_10 = arith.constant 0 : index
    %10 = vector.load %arg5[%c0_9, %c0_10] : memref<1x32xf32, #tpu.memory_space<vmem>>, vector<1x32xf32>
    %11 = vector.broadcast %10 : vector<1x32xf32> to vector<8x32xf32>
    %12 = arith.addf %9, %11 : vector<8x32xf32>
    %13 = arith.addf %12, %0 : vector<8x32xf32>
    %cst_11 = arith.constant dense<0.000000e+00> : vector<8xf32>
    %14 = vector.multi_reduction <add>, %13, %cst_11 [1] : vector<8x32xf32> to vector<8xf32>
    %15 = vector.shape_cast %14 : vector<8xf32> to vector<8x1xf32>
    %cst_12 = arith.constant 3.200000e+01 : f32
    %16 = vector.broadcast %cst_12 : f32 to vector<8x1xf32>
    %17 = arith.divf %15, %16 : vector<8x1xf32>
    %18 = vector.broadcast %17 : vector<8x1xf32> to vector<8x32xf32>
    %19 = arith.subf %13, %18 : vector<8x32xf32>
    %20 = arith.mulf %19, %19 : vector<8x32xf32>
    %cst_13 = arith.constant dense<0.000000e+00> : vector<8xf32>
    %21 = vector.multi_reduction <add>, %20, %cst_13 [1] : vector<8x32xf32> to vector<8xf32>
    %22 = vector.shape_cast %21 : vector<8xf32> to vector<8x1xf32>
    %cst_14 = arith.constant 3.200000e+01 : f32
    %23 = vector.broadcast %cst_14 : f32 to vector<8x1xf32>
    %24 = arith.divf %22, %23 : vector<8x1xf32>
    %cst_15 = arith.constant 9.99999974E-6 : f32
    %25 = vector.broadcast %cst_15 : f32 to vector<8x1xf32>
    %26 = arith.addf %24, %25 : vector<8x1xf32>
    %27 = math.rsqrt %26 : vector<8x1xf32>
    %28 = vector.broadcast %27 : vector<8x1xf32> to vector<8x32xf32>
    %29 = arith.mulf %19, %28 : vector<8x32xf32>
    %c0_16 = arith.constant 0 : index
    %c0_17 = arith.constant 0 : index
    %30 = vector.load %arg6[%c0_16, %c0_17] : memref<8x32xf32, #tpu.memory_space<vmem>>, vector<8x32xf32>
    tpu.vector_store %arg6[%c0_16, %c0_17], %29 {strides = array<i32>} : memref<8x32xf32, #tpu.memory_space<vmem>>, vector<8x32xf32>,
    return
  }
  func.func @transform_0(%arg0: i32) -> (i32, i32) {
    %c0_i32 = arith.constant 0 : i32
    %c0_i32_0 = arith.constant 0 : i32
    return %arg0, %c0_i32 : i32, i32
  }
  func.func @transform_1(%arg0: i32) -> (i32, i32) {
    %c0_i32 = arith.constant 0 : i32
    %c0_i32_0 = arith.constant 0 : i32
    %c0_i32_1 = arith.constant 0 : i32
    return %c0_i32, %c0_i32_0 : i32, i32
  }
  func.func @transform_2(%arg0: i32) -> (i32, i32) {
    %c0_i32 = arith.constant 0 : i32
    %c0_i32_0 = arith.constant 0 : i32
    %c0_i32_1 = arith.constant 0 : i32
    return %c0_i32, %c0_i32_0 : i32, i32
  }
  func.func @transform_3(%arg0: i32) -> (i32, i32) {
    %c0_i32 = arith.constant 0 : i32
    %c0_i32_0 = arith.constant 0 : i32
    %c0_i32_1 = arith.constant 0 : i32
    return %c0_i32, %c0_i32_0 : i32, i32
  }
  func.func @transform_4(%arg0: i32) -> (i32, i32) {
    %c0_i32 = arith.constant 0 : i32
    %c0_i32_0 = arith.constant 0 : i32
    %c0_i32_1 = arith.constant 0 : i32
    return %c0_i32, %c0_i32_0 : i32, i32
  }
  func.func @transform_5(%arg0: i32) -> (i32, i32) {
    %c0_i32 = arith.constant 0 : i32
    %c0_i32_0 = arith.constant 0 : i32
    return %arg0, %c0_i32 : i32, i32
  }
}

</mosaic_0001>

<bundles_post_ra>
// kernel: _poswise_ffn_impl.1
= control target key start
LH: loop header
LB: loop body
LE: loop exit
PB: predicated region body
PF: predicated region fallthrough
CT: control target
= control target key end

     0   :  { %10 = vsyncpa [#allocation3], 0  ;;  %s849_s0 = inlined_call_operand.vmem [shape: f32[16,32], index: 0, kind: input, shape index: {}]   ;;  %s850_s1 = inlined_call_operand.vmem [shape: f32[32,64], index: 1, kind: input, shape index: {}]   ;;  %s851_s2 = inlined_call_operand.vmem [shape: f32[1,64], index: 2, kind: input, shape index: {}]   ;;  %s852_s3 = inlined_call_operand.vmem [shape: f32[64,32], index: 3, kind: input, shape index: {}]   ;;  %s853_s4 = inlined_call_operand.vmem [shape: f32[1,32], index: 4, kind: input, shape index: {}]   ;;  %s854_s5 = inlined_call_operand.hbm [shape: f32[16,32], index: 5, kind: output, shape index: {}]  }
   0x1   :  { %12 = vsyncpa [#allocation3 + $0x1], 0  ;;  %s703_s18 = smov 0   ;;  %s705_s19 = smov 0  }
   0x2   :  { %s707_s20 = smov 0   ;;  %s709_s21 = smov 0  }
   0x3 LB: > { %s724_s22 = sadd.s32 4294967295, %s667_s21   ;;  %s485_s23 = sadd.s32 4294967294, %s667_s21   ;;  %s667_s21 = sphi %s709_s21, %s860_s21   ;;  %s663_s20 = sphi %s707_s20, %s859_s20   ;;  %s659_s19 = sphi %s705_s19, %s858_s19   ;;  %s655_s18 = sphi %s703_s18, %s857_s18  }
   0x4   : > { %s728_s24 = sadd.s32 1, %s667_s21   ;;  %s135_s25 = sadd.s32 1, %s663_s20 }
   0x5   : > { %s132_s26 = ssub.s32 %s667_s21, %s728_s24  ;;  %p145_p0 = scmp.ne.s32.totalorder %s663_s20, %s659_s19 }
   0x6   : > { %p133_p1 = scmp.eq.s32.totalorder %s132_s26, 0  ;;  %p146_p2 = scmp.eq.s32.totalorder %s724_s22, 1 }
   0x7   : > { %p151_p3 = scmp.ne.s32.totalorder %s659_s19, %s655_s18  ;;  %p152_p4 = scmp.eq.s32.totalorder %s485_s23, 1 }
   0x8   : > { %s739_s27 = scalar_select %p133_p1, %s663_s20, %s135_s25  }
   0x9   : > { %p741_p5 = por %p146_p2, %p145_p0  ;;  %p745_p6 = por %p152_p4, %p151_p3 }
   0xa   : > { %p488_p7 = scmp.ge.s32.totalorder %s667_s21, 1  ;;  %p189_p8 = scmp.lt.s32.totalorder %s667_s21, 3 }
   0xc   : > { %p190_p9 = pnand %p488_p7, %p189_p8 }
   0xd   : > { %v221_v0 = vld [vmem:[%s850_s1] sm:$0xff] (!%p190_p9)  ;;  %v222_v1 = vld [vmem:[%s850_s1 + $0x8] sm:$0xff] (!%p190_p9)  ;;  %v223_v2 = vld [vmem:[%s850_s1 + $0x10] sm:$0xff] (!%p190_p9)  ;;  %v669_v3 = vmov (!%p190_p9), 0.0|0.0   ;;  %vm670_vm0 = vmmov (!%p190_p9), 0   ;;  %v671_v6 = vmov (!%p190_p9), 0.0  }
   0xe   : > { %193 = sbr.rel (%p190_p9) target bundleno = 781 (0x30d), region = 40  ;;  %543 = vmatprep.subr.bf16.mxu0 (!%p190_p9), %v669_v3  ;;  %v544_v4 = vpack.c.bf16 (!%p190_p9), %v222_v1, %v221_v0  ;;  %v224_v5 = vld [vmem:[%s850_s1 + $0x18] sm:$0xff] (!%p190_p9)  ;;  %521 = vmatprep.mubr.msk.f32.mxu0 (!%p190_p9), %vm670_vm0, %v671_v6  ;;  %p216_p10 = scmp.lt.s32.totalorder (!%p190_p9), %s724_s22, 1  ;;  %v225_v7 = vld [vmem:[%s852_s3] sm:$0xff] (!%p190_p9)  ;;  %v226_v8 = vld [vmem:[%s852_s3 + $0x8] sm:$0xff] (!%p190_p9)  ;;  %vm240_vm1 = vcmask (!%p190_p9), 261120  }
   0xf   : > { %549 = vmatprep.subr.bf16.mxu1 (!%p190_p9), %v669_v3  ;;  %v550_v9 = vpack.c.bf16 (!%p190_p9), %v226_v8, %v225_v7  ;;  %v227_v10 = vld [vmem:[%s852_s3 + $0x10] sm:$0xff] (!%p190_p9)  ;;  %v228_v11 = vld [vmem:[%s852_s3 + $0x18] sm:$0xff] (!%p190_p9)  ;;  %540 = vmatprep.mubr.msk.f32.mxu1 (!%p190_p9), %vm670_vm0, %v671_v6  ;;  %v547_v12 = vpack.c.bf16 (!%p190_p9), %v224_v5, %v223_v2  ;;  %v229_v14 = vld [vmem:[%s852_s3 + $0x20] sm:$0xff] (!%p190_p9)  ;;  %vm322_vm2 = vcmask (!%p190_p9), 523264   ;;  %s496_s8 = sshll.u32 (!%p190_p9), %s724_s22, 7 }
  0x10   : > { %545 = vmatpush3.bf16.msra.mxu0 (!%p190_p9), %v544_v4  ;;  %v553_v13 = vpack.c.bf16 (!%p190_p9), %v228_v11, %v227_v10  ;;  %v230_v15 = vld [vmem:[%s852_s3 + $0x28] sm:$0xff] (!%p190_p9)  ;;  %v231_v18 = vld [vmem:[%s852_s3 + $0x30] sm:$0xff] (!%p190_p9)  ;;  %v232_v19 = vld [vmem:[%s852_s3 + $0x38] sm:$0xff] (!%p190_p9) }
  0x11   : > { %546 = vmatprep.subr.bf16.mxu0 (!%p190_p9), %v669_v3  ;;  %551 = vmatpush3.bf16.msra.mxu1 (!%p190_p9), %v550_v9  ;;  %v556_v17 = vpack.c.bf16 (!%p190_p9), %v230_v15, %v229_v14  ;;  %v559_v20 = vpack.c.bf16 (!%p190_p9), %v232_v19, %v231_v18  ;;  %v491_v21 = vld [vmem:[%s851_s2] ss:$0 sm:$0xff] (!%p190_p9) }
  0x12   : > { %552 = vmatprep.subr.bf16.mxu1 (!%p190_p9), %v669_v3  ;;  %v493_v26 = vld [vmem:[%s853_s4] ss:$0 sm:$0xff] (!%p190_p9) }
  0x14   : > { %548 = vmatpush3.bf16.msra.mxu0 (!%p190_p9), %v547_v12 }
  0x15   : > { %s217_s30 = scalar_select %p216_p10, %s724_s22, 1  ;;  %554 = vmatpush3.bf16.msra.mxu1 %v553_v13 }
  0x16   : > { %555 = vmatprep.subr.bf16.mxu1 %v669_v3  ;;  %s672_s22 = smov [#allocation2]  }
  0x17   : > { %s490_s6 = sshll.u32 %s217_s30, 3  ;;  %s609_s16 = sshll.u32 %s672_s22, 4  ;;  %s610_s16 = int_to_ptr.vmem [resolvable:$false] %s609_s16 }
  0x18   : > { %s219_s13 = scalar_lea.vmem %s849_s0, %s490_s6  ;;  %s213_s6 = sand.u32 1, %s659_s19  }
  0x19   : > { %v220_v16 = vld [vmem:[%s219_s13] sm:$0xff]  ;;  %557 = vmatpush3.bf16.msra.mxu1 %v556_v17  ;;  %s489_s7 = sshll.u32 %s213_s6, 3  ;;  %s806_s13 = scalar_lea.hbm %s854_s5, %s496_s8 }
  0x1a   : > { %522 = vmatmul.mubr.msk.f32.vlgmr.msra.gmra.mrb[0].mxu0 %vm240_vm1, %v220_v16  ;;  %558 = vmatprep.subr.bf16.mxu1 %v669_v3  ;;  %s215_s9 = scalar_lea.vmem [#allocation2], %s489_s7  ;;  %s413_s14 = scalar_lea.sflag [#allocation3], %s213_s6 }
  0x1b   : > { %s426_s10 = sshll.u32 %s215_s9, 4  ;;  %s611_s17 = scalar_lea.vmem %s610_s16, 256  ;;  %s808_s10 = int_to_ptr.vmem [resolvable:$true] %s426_s10 }
  0x1c   : > { %s605_s15 = scalar_lea.vmem %s808_s10, 128  ;;  %p612_p0 = scmp.lt.s32.totalorder %s808_s10, %s610_s16 }
  0x1d   : > { %560 = vmatpush3.bf16.msra.mxu1 %v559_v20  ;;  %p606_p11 = scmp.ne.s32.totalorder %s808_s10, %s605_s15  ;;  %p613_p1 = scmp.lt.s32.totalorder %s611_s17, %s605_s15 }
  0x1f   : > { %p607_p12 = pnand %p606_p11, %p741_p5  ;;  %p614_p2 = por %p613_p1, %p612_p0 }
  0x21   : > { %p608_p13 = pneg %p607_p12 }
  0x23   : > { %p615_p3 = pnand %p614_p2, %p608_p13 }
  0xed   : > { %v310_v22 = vpop.f32.mrb[0].mxu0 }
  0xee   : > { %v311_v23 = vadd.f32 %v491_v21, %v310_v22  ;;  %v523_v24 = vpop.f32.mrb[1].mxu0 }
  0xf0   : > { %v314_v25 = vmax.f32 %v311_v23, 0.0 }
  0xf2   : > { %541 = vmatmul.mubr.msk.f32.vlgmr.msra.gmra.mrb[0].mxu1 %vm322_vm2, %v314_v25 }
 0x1c5   : > { %v392_v27 = vpop.f32.mrb[0].mxu1 }
 0x1c6   : > { %v393_v28 = vadd.f32 %v493_v26, %v392_v27  ;;  %v542_v29 = vpop.f32.mrb[1].mxu1 }
 0x1c8   : > { %v396_v30 = vadd.f32 %v393_v28, %v220_v16 }
 0x1ca   : > { %v397_v31 = vsel %vm240_vm1, %v396_v30, 0.0 }
 0x1cb   : > { %398 = vadd.xlane.f32.xlu0 %v397_v31 }
 0x258   : > { %v399_v32 = vpop.xlane.xlu0 %398 }
 0x259   : > { %v401_v33 = vmul.f32 0.03125, %v399_v32 }
 0x25b   : > { %v402_v34 = vsub.f32 %v396_v30, %v401_v33 }
 0x25d   : > { %v403_v35 = vmul.f32 %v402_v34, %v402_v34 }
 0x25f   : > { %v404_v36 = vsel %vm240_vm1, %v403_v35, 0.0 }
 0x260   : > { %405 = vadd.xlane.f32.xlu0 %v404_v36 }
 0x2ed   : > { %v406_v37 = vpop.xlane.xlu0 %405 }
 0x2ee   : > { %v407_v38 = vmul.f32 0.03125, %v406_v37 }
 0x2f0   : > { %v408_v39 = vadd.f32 1e-05, %v407_v38 }
 0x2f2   : > { %603 = vrsqrt.f32 %v408_v39 }
 0x2fc   : > { %v604_v40 = vpop.eup %603 }
 0x2fd   : > { %v410_v41 = vmul.f32 %v604_v40, %v402_v34 }
 0x2ff   : > { %411 = vst.msk [vmem:[%s215_s9] sm:$0xff] %vm240_vm1, %v410_v41 }
 0x300   : > { %618 = shalt.err (!%p615_p3)
}
 0x301   : > { %s619_s23 = scalar_lea.hbm %s806_s13, 128  ;;  %s623_s30 = scalar_lea.hbm %s854_s5, 256 }
 0x302   : > { %p620_p4 = scmp.ne.s32.totalorder %s806_s13, %s619_s23  ;;  %p624_p9 = scmp.lt.u32.totalorder %s806_s13, %s854_s5 }
 0x303   : > { %p625_p10 = scmp.lt.u32.totalorder %s623_s30, %s619_s23  ;;  %p627_p12 = scmp.lt.u32.totalorder %s619_s23, %s806_s13 }
 0x304   : > { %p621_p7 = pnand %p620_p4, %p741_p5 }
 0x305   : > { %p626_p11 = por %p625_p10, %p624_p9 }
 0x306   : > { %p622_p8 = pneg %p621_p7 }
 0x307   : > { %p628_p13 = por %p627_p12, %p626_p11 }
 0x309   : > { %p629_p0 = pnand %p628_p13, %p622_p8 }
 0x30b   : > { %632 = shalt.err (!%p629_p0)
}
 0x30c   : > { %561 = dma.vmem_to_hbm [thread:$0]  (%p741_p5), %s808_s10, 128, %s806_s13, %s413_s14  }
 0x30d PF: > { %p567_p1 = scmp.ge.s32.totalorder %s667_s21, 2  ;;  %s438_s8 = sand.u32 1, %s655_s18  }
 0x30e   : > { %s439_s9 = scalar_lea.sflag [#allocation3], %s438_s8 }
 0x30f   : > { %p564_p2 = pnand %p567_p1, %p745_p6 }
 0x311   : > { %650 = dma.done.wait (!%p564_p2), %s439_s9, 128  }
 0x312   : > { %652 = vsyncadd (!%p564_p2), %s439_s9, 4294967168  ;;  %p15_p3 = scmp.ge.s32.totalorder %s728_s24, 4   ;;  %s857_s18 = smov %s659_s19 }
 0x313   : > { %s858_s19 = smov %s663_s20  ;;  %s859_s20 = smov %s739_s27 }
 0x314   : > { %s860_s21 = smov %s728_s24  ;;  %17 = sbr.rel (!%p15_p3) target bundleno = 3 (0x3), region = 75 }
 0x31b   :  { %444 = vsyncpa [#allocation3], 1 }
 0x31c   :  { %446 = vsyncpa [#allocation3 + $0x1], 1 }

</bundles_post_ra>
